<compile_context>
chip_gen: v7x
topology: tpu7x:2x2x1
jax: 0.10.0
libtpu: 0.0.40
codegen_flags: <defaults>
</compile_context>

<pallas_src>
import jax
import jax.numpy as jnp
from jax.experimental import pallas as pl
from jax.experimental.pallas import tpu as pltpu


def _rel_logits_kernel(qc_ref, qsw_ref, kh_ref, kw_ref, eh_ref, ew_ref,
                       oh_ref, ow_ref):
    # qc_ref  : [TG, H, W]    qc[g,x,y]  = sum_c q[g,x,y,c]          (f32)
    # qsw_ref : [TG, H, C]    qsw[g,x,c] = sum_y q[g,x,y,c]          (f32)
    # kh_ref  : [TG, 1, W*C]  kh[g,0,y*C+m] = sum_d rel_h[head(g),m,d] (f32)
    # kw_ref  : [TG, 1, C*C]  kw[g,0,c*C+m] = sum_d rel_w[head(g),m,d] (f32)
    # eh_ref  : [W,  W*C]     expand matrix  eh[y', y*C+m] = (y'==y)
    # ew_ref  : [C,  C*C]     expand matrix  ew[c', c*C+m] = (c'==c)
    # oh_ref  : [TG, H, W*C]  flattened rel_logits_h
    # ow_ref  : [TG, H, C*C]  flattened rel_logits_w
    tg, H, _ = qc_ref.shape
    WC = oh_ref.shape[-1]
    CC = ow_ref.shape[-1]

    # Expand the tiny reductions to full output lane width on the (otherwise
    # idle) MXU, scale by the per-(b,h) encoding row, and emit one dense,
    # unmasked full-lane store per output ref.
    qc = qc_ref[...].reshape(tg * H, qc_ref.shape[-1])        # [TG*H, W]
    oh = jnp.dot(qc, eh_ref[...], preferred_element_type=jnp.float32)
    oh = oh.reshape(tg, H, WC) * kh_ref[...]                  # bcast over H
    oh_ref[...] = oh.astype(oh_ref.dtype)

    qsw = qsw_ref[...].reshape(tg * H, qsw_ref.shape[-1])     # [TG*H, C]
    ow = jnp.dot(qsw, ew_ref[...], preferred_element_type=jnp.float32)
    ow = ow.reshape(tg, H, CC) * kw_ref[...]
    ow_ref[...] = ow.astype(ow_ref.dtype)


def _vmem_capacity_bytes():
    try:
        cap = int(pltpu.get_tpu_info().vmem_capacity_bytes)
        if cap <= 0:
            raise ValueError("bad vmem capacity")
        return cap
    except Exception:
        # Conservative fallback = smallest current generation (v7x: 64 MiB/TC).
        return 64 * 1024 * 1024


def _choose_block_g(total_g, per_g_bytes, budget_bytes):
    """Largest divisor of total_g whose per-step block fits the budget,
    strongly preferring an even grid extent (2 TensorCores on v7x).  Even-grid
    preference never shrinks the block by more than 4x."""
    divisors = [d for d in range(1, total_g + 1) if total_g % d == 0]
    fitting = [d for d in divisors if d * per_g_bytes <= budget_bytes] or [1]
    best = fitting[-1]
    even = [d for d in fitting if (total_g // d) % 2 == 0]
    if even and even[-1] * 4 >= best:
        return even[-1]
    return best


@jax.jit
def relative_logits(q, rel_encoding_h, rel_encoding_w):
    B, NH, H, W, C = q.shape
    assert rel_encoding_h.shape == (NH, C, 2 * H - 1)
    assert rel_encoding_w.shape == (NH, C, 2 * W - 1)
    G = B * NH
    WC, CC = W * C, C * C
    f32 = jnp.float32

    # ---- tiny loop-invariant reductions, accumulated in f32 (one fused pass
    # over q under jit); everything large stays for the kernel to stream. ----
    q32 = q.astype(f32)
    qc = jnp.sum(q32, axis=-1).reshape(G, H, W)          # sum over channels c
    qsw = jnp.sum(q32, axis=3).reshape(G, H, C)          # sum over columns  y

    kh_sum = jnp.sum(rel_encoding_h.astype(f32), axis=-1)         # [NH, C]
    kw_sum = jnp.sum(rel_encoding_w.astype(f32), axis=-1)         # [NH, C]
    # Row g = b*NH + h, pre-tiled to full output lane width (dense stores).
    kh_tiled = jnp.tile(jnp.tile(kh_sum, (B, 1)), (1, W)).reshape(G, 1, WC)
    kw_tiled = jnp.tile(jnp.tile(kw_sum, (B, 1)), (1, C)).reshape(G, 1, CC)

    # Constant 0/1 expand matrices (MXU "repeat each element C times").
    eh = jnp.kron(jnp.eye(W, dtype=f32), jnp.ones((1, C), f32))   # [W, W*C]
    ew = jnp.kron(jnp.eye(C, dtype=f32), jnp.ones((1, C), f32))   # [C, C*C]

    # ---- block sizing from actual VMEM, double-buffering accounted for ----
    out_item = jnp.dtype(q.dtype).itemsize
    per_g_bytes = (out_item * H * (WC + CC)        # out_h + out_w rows
                   + 4 * H * (W + C)               # qc + qsw rows (f32)
                   + 4 * (WC + CC))                # kh + kw rows  (f32)
    const_bytes = 4 * (W * WC + C * CC)            # expand matrices
    vmem_cap = _vmem_capacity_bytes()
    # Per-step block budget: double-buffered footprint stays under ~60% of
    # VMEM, capped at 24 MiB/step (=> <=~19 MiB/step on v7x's 64 MiB).
    budget = max(2 * 1024 * 1024, min((vmem_cap * 3) // 10, 24 * 1024 * 1024))
    tg = _choose_block_g(G, per_g_bytes, max(budget - const_bytes, per_g_bytes))
    grid = (G // tg,)
    vmem_limit = int(min(vmem_cap,
                         max(32 * 1024 * 1024,
                             2 * (tg * per_g_bytes + const_bytes) + (8 << 20))))

    out_h_flat, out_w_flat = pl.pallas_call(
        _rel_logits_kernel,
        out_shape=(
            jax.ShapeDtypeStruct((G, H, WC), q.dtype),
            jax.ShapeDtypeStruct((G, H, CC), q.dtype),
        ),
        grid=grid,
        in_specs=[
            pl.BlockSpec((tg, H, W), lambda i: (i, 0, 0)),    # qc
            pl.BlockSpec((tg, H, C), lambda i: (i, 0, 0)),    # qsw
            pl.BlockSpec((tg, 1, WC), lambda i: (i, 0, 0)),   # kh_tiled
            pl.BlockSpec((tg, 1, CC), lambda i: (i, 0, 0)),   # kw_tiled
            pl.BlockSpec((W, WC), lambda i: (0, 0)),          # eh (constant)
            pl.BlockSpec((C, CC), lambda i: (0, 0)),          # ew (constant)
        ],
        out_specs=(
            pl.BlockSpec((tg, H, WC), lambda i: (i, 0, 0)),
            pl.BlockSpec((tg, H, CC), lambda i: (i, 0, 0)),
        ),
        compiler_params=pltpu.CompilerParams(
            dimension_semantics=("parallel",),
            vmem_limit_bytes=vmem_limit,
        ),
    )(qc, qsw, kh_tiled, kw_tiled, eh, ew)

    out_h = out_h_flat.reshape(B, NH, H, W, C)
    out_w = out_w_flat.reshape(B, NH, H, C, C)
    return out_h, out_w


def relative_logits_reference(q, rel_h, rel_w):
    # Pure-JAX transcription of the PyTorch forward (for a correctness check).
    out_h = jnp.einsum('bhxyc,hmd->bhxym', q, rel_h)
    q_t = jnp.swapaxes(q, 3, 4)
    out_w = jnp.einsum('bhxyc,hmd->bhxym', q_t, rel_w)
    return out_h, out_w


if __name__ == "__main__":
    # Small, deterministic example consistent with the module's shapes.
    B, NH, H, W, C = 2, 2, 8, 8, 16

    key = jax.random.PRNGKey(0)
    kq, kh, kw = jax.random.split(key, 3)

    q = jax.random.normal(kq, (B, NH, H, W, C), dtype=jnp.float32)
    # Parameters from __init__: randn(num_heads, channels, 2*H-1 / 2*W-1)
    rel_encoding_h = jax.random.normal(kh, (NH, C, 2 * H - 1), dtype=jnp.float32)
    rel_encoding_w = jax.random.normal(kw, (NH, C, 2 * W - 1), dtype=jnp.float32)

    out_h, out_w = relative_logits(q, rel_encoding_h, rel_encoding_w)
    jax.block_until_ready((out_h, out_w))

    ref_h, ref_w = relative_logits_reference(q, rel_encoding_h, rel_encoding_w)
    assert out_h.shape == (B, NH, H, W, C)
    assert out_w.shape == (B, NH, H, C, C)
    # rtol covers possible reduced-precision MXU passes in the (0/1) expand
    # matmuls; errors there are purely relative, so this is a tight check.
    assert jnp.allclose(out_h, ref_h, rtol=1e-2, atol=1e-4)
    assert jnp.allclose(out_w, ref_w, rtol=1e-2, atol=1e-4)

    print("KERNEL_OK")
</pallas_src>

<mosaic_0001>
module attributes {stable_mosaic.version = 11 : i64} {
  func.func @_rel_logits_kernel(%arg0: i32, %arg1: memref<2x8x8xf32, #tpu.memory_space<vmem>>, %arg2: memref<2x8x16xf32, #tpu.memory_space<vmem>>, %arg3: memref<2x1x128xf32, #tpu.memory_space<vmem>>, %arg4: memref<2x1x256xf32, #tpu.memory_space<vmem>>, %arg5: memref<8x128xf32, #tpu.memory_space<vmem>>, %arg6: memref<16x256xf32, #tpu.memory_space<vmem>>, %arg7: memref<2x8x128xf32, #tpu.memory_space<vmem>>, %arg8: memref<2x8x256xf32, #tpu.memory_space<vmem>>) attributes {dimension_semantics = [#tpu.dimension_semantics<parallel>], iteration_bounds = array<i64: 2>, scalar_prefetch = 0 : i64, scratch_operands = 0 : i64, tpu.core_type = #tpu.core_type<tc>, window_params = [{transform_indices = @transform_0, window_bounds = array<i64: 2, 8, 8>}, {transform_indices = @transform_1, window_bounds = array<i64: 2, 8, 16>}, {transform_indices = @transform_2, window_bounds = array<i64: 2, 1, 128>}, {transform_indices = @transform_3, window_bounds = array<i64: 2, 1, 256>}, {pipeline_mode = #tpu.pipeline_mode<synchronous>, transform_indices = @transform_4, window_bounds = array<i64: 8, 128>}, {pipeline_mode = #tpu.pipeline_mode<synchronous>, transform_indices = @transform_5, window_bounds = array<i64: 16, 256>}, {transform_indices = @transform_6, window_bounds = array<i64: 2, 8, 128>}, {transform_indices = @transform_7, window_bounds = array<i64: 2, 8, 256>}]} {
    %c0 = arith.constant 0 : index
    %c0_0 = arith.constant 0 : index
    %c0_1 = arith.constant 0 : index
    %0 = vector.load %arg1[%c0, %c0_0, %c0_1] : memref<2x8x8xf32, #tpu.memory_space<vmem>>, vector<2x8x8xf32>
    %1 = vector.shape_cast %0 : vector<2x8x8xf32> to vector<16x8xf32>
    %c0_2 = arith.constant 0 : index
    %c0_3 = arith.constant 0 : index
    %2 = vector.load %arg5[%c0_2, %c0_3] : memref<8x128xf32, #tpu.memory_space<vmem>>, vector<8x128xf32>
    %cst = arith.constant dense<0.000000e+00> : vector<16x128xf32>
    %3 = tpu.matmul %1, %2, %cst {dimension_numbers = #tpu.dot_dimension_numbers<[1], [0], [0], [1], [0, 0, 1, 1], [], []>} : vector<16x8xf32>, vector<8x128xf32>, vector<16x128xf32> -> vector<16x128xf32>
    %4 = vector.shape_cast %3 : vector<16x128xf32> to vector<2x8x128xf32>
    %c0_4 = arith.constant 0 : index
    %c0_5 = arith.constant 0 : index
    %c0_6 = arith.constant 0 : index
    %5 = vector.load %arg3[%c0_4, %c0_5, %c0_6] : memref<2x1x128xf32, #tpu.memory_space<vmem>>, vector<2x1x128xf32>
    %6 = vector.broadcast %5 : vector<2x1x128xf32> to vector<2x8x128xf32>
    %7 = arith.mulf %4, %6 : vector<2x8x128xf32>
    %c0_7 = arith.constant 0 : index
    %c0_8 = arith.constant 0 : index
    %c0_9 = arith.constant 0 : index
    %8 = vector.load %arg7[%c0_7, %c0_8, %c0_9] : memref<2x8x128xf32, #tpu.memory_space<vmem>>, vector<2x8x128xf32>
    tpu.vector_store %arg7[%c0_7, %c0_8, %c0_9], %7 {strides = array<i32>} : memref<2x8x128xf32, #tpu.memory_space<vmem>>, vector<2x8x128xf32>,
    %c0_10 = arith.constant 0 : index
    %c0_11 = arith.constant 0 : index
    %c0_12 = arith.constant 0 : index
    %9 = vector.load %arg2[%c0_10, %c0_11, %c0_12] : memref<2x8x16xf32, #tpu.memory_space<vmem>>, vector<2x8x16xf32>
    %10 = vector.shape_cast %9 : vector<2x8x16xf32> to vector<16x16xf32>
    %c0_13 = arith.constant 0 : index
    %c0_14 = arith.constant 0 : index
    %11 = vector.load %arg6[%c0_13, %c0_14] : memref<16x256xf32, #tpu.memory_space<vmem>>, vector<16x256xf32>
    %cst_15 = arith.constant dense<0.000000e+00> : vector<16x256xf32>
    %12 = tpu.matmul %10, %11, %cst_15 {dimension_numbers = #tpu.dot_dimension_numbers<[1], [0], [0], [1], [0, 0, 1, 1], [], []>} : vector<16x16xf32>, vector<16x256xf32>, vector<16x256xf32> -> vector<16x256xf32>
    %13 = vector.shape_cast %12 : vector<16x256xf32> to vector<2x8x256xf32>
    %c0_16 = arith.constant 0 : index
    %c0_17 = arith.constant 0 : index
    %c0_18 = arith.constant 0 : index
    %14 = vector.load %arg4[%c0_16, %c0_17, %c0_18] : memref<2x1x256xf32, #tpu.memory_space<vmem>>, vector<2x1x256xf32>
    %15 = vector.broadcast %14 : vector<2x1x256xf32> to vector<2x8x256xf32>
    %16 = arith.mulf %13, %15 : vector<2x8x256xf32>
    %c0_19 = arith.constant 0 : index
    %c0_20 = arith.constant 0 : index
    %c0_21 = arith.constant 0 : index
    %17 = vector.load %arg8[%c0_19, %c0_20, %c0_21] : memref<2x8x256xf32, #tpu.memory_space<vmem>>, vector<2x8x256xf32>
    tpu.vector_store %arg8[%c0_19, %c0_20, %c0_21], %16 {strides = array<i32>} : memref<2x8x256xf32, #tpu.memory_space<vmem>>, vector<2x8x256xf32>,
    return
  }
  func.func @transform_0(%arg0: i32) -> (i32, i32, i32) {
    %c0_i32 = arith.constant 0 : i32
    %c0_i32_0 = arith.constant 0 : i32
    %c0_i32_1 = arith.constant 0 : i32
    return %arg0, %c0_i32, %c0_i32_0 : i32, i32, i32
  }
  func.func @transform_1(%arg0: i32) -> (i32, i32, i32) {
    %c0_i32 = arith.constant 0 : i32
    %c0_i32_0 = arith.constant 0 : i32
    %c0_i32_1 = arith.constant 0 : i32
    return %arg0, %c0_i32, %c0_i32_0 : i32, i32, i32
  }
  func.func @transform_2(%arg0: i32) -> (i32, i32, i32) {
    %c0_i32 = arith.constant 0 : i32
    %c0_i32_0 = arith.constant 0 : i32
    %c0_i32_1 = arith.constant 0 : i32
    return %arg0, %c0_i32, %c0_i32_0 : i32, i32, i32
  }
  func.func @transform_3(%arg0: i32) -> (i32, i32, i32) {
    %c0_i32 = arith.constant 0 : i32
    %c0_i32_0 = arith.constant 0 : i32
    %c0_i32_1 = arith.constant 0 : i32
    return %arg0, %c0_i32, %c0_i32_0 : i32, i32, i32
  }
  func.func @transform_4(%arg0: i32) -> (i32, i32) {
    %c0_i32 = arith.constant 0 : i32
    %c0_i32_0 = arith.constant 0 : i32
    %c0_i32_1 = arith.constant 0 : i32
    return %c0_i32, %c0_i32_0 : i32, i32
  }
  func.func @transform_5(%arg0: i32) -> (i32, i32) {
    %c0_i32 = arith.constant 0 : i32
    %c0_i32_0 = arith.constant 0 : i32
    %c0_i32_1 = arith.constant 0 : i32
    return %c0_i32, %c0_i32_0 : i32, i32
  }
  func.func @transform_6(%arg0: i32) -> (i32, i32, i32) {
    %c0_i32 = arith.constant 0 : i32
    %c0_i32_0 = arith.constant 0 : i32
    %c0_i32_1 = arith.constant 0 : i32
    return %arg0, %c0_i32, %c0_i32_0 : i32, i32, i32
  }
  func.func @transform_7(%arg0: i32) -> (i32, i32, i32) {
    %c0_i32 = arith.constant 0 : i32
    %c0_i32_0 = arith.constant 0 : i32
    %c0_i32_1 = arith.constant 0 : i32
    return %arg0, %c0_i32, %c0_i32_0 : i32, i32, i32
  }
}

</mosaic_0001>

<bundles_post_ra>
// kernel: relative_logits.1
= control target key start
LH: loop header
LB: loop body
LE: loop exit
PB: predicated region body
PF: predicated region fallthrough
CT: control target
= control target key end

     0   :  { %s809_s24 = smov 0   ;;  %s864_s0 = inlined_call_operand.vmem [shape: f32[4,8,8], index: 0, kind: input, shape index: {}]   ;;  %s865_s1 = inlined_call_operand.vmem [shape: f32[4,8,16], index: 1, kind: input, shape index: {}]   ;;  %s866_s2 = inlined_call_operand.vmem [shape: f32[4,1,128], index: 2, kind: input, shape index: {}]   ;;  %s867_s3 = inlined_call_operand.vmem [shape: f32[4,1,256], index: 3, kind: input, shape index: {}]   ;;  %s868_s4 = inlined_call_operand.vmem [shape: f32[8,128], index: 4, kind: input, shape index: {}]   ;;  %s869_s5 = inlined_call_operand.vmem [shape: f32[16,256], index: 5, kind: input, shape index: {}]   ;;  %s870_s6 = inlined_call_operand.vmem [shape: f32[4,8,128], index: 6, kind: output, shape index: {0}]   ;;  %s871_s7 = inlined_call_operand.vmem [shape: f32[4,8,256], index: 7, kind: output, shape index: {1}]  }
   0x1 LB: > { %s711_s25 = sadd.s32 4294967295, %s766_s24   ;;  %p715_p0 = scmp.ge.s32.totalorder %s766_s24, 1  ;;  %s766_s24 = sphi %s809_s24, %s18_s24  }
   0x2   : > { %p273_p1 = scmp.lt.s32.totalorder %s766_s24, 3 }
   0x4   : > { %p274_p2 = pnand %p715_p0, %p273_p1 }
   0x5   : > { %v363_v0 = vld [vmem:[%s868_s4] sm:$0xff] (!%p274_p2)  ;;  %s716_s28 = sshll.u32 (!%p274_p2), %s711_s25, 1  ;;  %v467_v1 = vld [vmem:[%s869_s5 + $0x8] sm:$0xff] (!%p274_p2)  ;;  %v469_v2 = vld [vmem:[%s869_s5 + $0x18] sm:$0xff] (!%p274_p2)  ;;  %v768_v6 = vmov (!%p274_p2), 0.0   ;;  %vm364_vm0 = vcmask (!%p274_p2), 64512   ;;  %v558_v12 = vlaneseq (!%p274_p2) }
   0x6   : > { %277 = sbr.rel (%p274_p2) target bundleno = 238 (0xee), region = 44  ;;  %740 = vmatprep.subr.mxu0 (!%p274_p2), %v363_v0  ;;  %p326_p3 = scmp.lt.s32.totalorder (!%p274_p2), %s716_s28, 3  ;;  %v745_v3 = vpack.c.bf16 (!%p274_p2), %v469_v2, %v467_v1  ;;  %v466_v4 = vld [vmem:[%s869_s5] sm:$0xff] (!%p274_p2)  ;;  %v468_v5 = vld [vmem:[%s869_s5 + $0x10] sm:$0xff] (!%p274_p2)  ;;  %547 = vmatprep.mubr.f32.mxu1 (!%p274_p2), %v768_v6  ;;  %vm470_vm1 = vcmask (!%p274_p2), 130048  }
   0x7   : > { %741 = vmatpush3.msra.mxu0 (!%p274_p2), %v363_v0  ;;  %v747_v7 = vpack.c.bf16 (!%p274_p2), %v468_v5, %v466_v4  ;;  %v559_v13 = vshrl.u32 (!%p274_p2), %v558_v12, 7 }
   0x8   : > { %746 = vmatprep.subr.bf16.mxu0 (!%p274_p2), %v745_v3  ;;  %749 = vmatprep.subr.bf16.mxu1 (!%p274_p2), %v745_v3 }
   0x9   : > { %750 = vmatpush1.bf16.msra.mxu1 (!%p274_p2), %v747_v7  ;;  %v560_v14 = vsub.s32 (!%p274_p2), 0, %v559_v13  ;;  %v564_v16 = vsub.s32 (!%p274_p2), 1, %v559_v13 }
   0xd   : > { %s873_s28 = smov (!%p326_p3, %s716_s28), 3 }
   0xe   : > { %s835_s14 = sshll.u32 %s873_s28, 3  ;;  %s722_s21 = sshll.u32 %s873_s28, 1 }
   0xf   : > { %s329_s17 = scalar_lea.vmem %s864_s0, %s835_s14  ;;  %s335_s20 = scalar_lea.vmem %s865_s1, %s835_s14 }
  0x10   : > { %v361_v8 = vld [vmem:[%s329_s17] sm:$0xff]  ;;  %v362_v9 = vld [vmem:[%s329_s17 + $0x8] sm:$0xff]  ;;  %s346_s25 = scalar_lea.vmem %s867_s3, %s722_s21  ;;  %s340_s29 = scalar_lea.vmem %s866_s2, %s873_s28 }
  0x11   : > { %742 = vmatprep.mubr.msk.f32.mxu0 %vm364_vm0, %v361_v8  ;;  %v465_v10 = vld [vmem:[%s335_s20 + $0x8] sm:$0xff]  ;;  %v464_v11 = vld [vmem:[%s335_s20] sm:$0xff]  ;;  %s352_s9 = scalar_lea.vmem %s870_s6, %s835_s14  ;;  %s736_s10 = sshll.u32 %s873_s28, 4 }
  0x12   : > { %743 = vmatmul.mubr.msk.f32.vlgmr.msra.gmra.mrb[0].mxu0 %vm364_vm0, %v362_v9  ;;  %733 = vmatmul.mubr.msk.f32.vlgmr.msra.gmra.mrb[0].mxu1 %vm470_vm1, %v465_v10  ;;  %v555_v15 = vld [vmem:[%s346_s25 + $0x2] sm:$0x3]  ;;  %v554_v17 = vld [vmem:[%s346_s25] sm:$0x3]  ;;  %s359_s13 = scalar_lea.vmem %s871_s7, %s736_s10 }
  0x13   : > { %748 = vmatpush1.bf16.msra.mxu0 %v747_v7  ;;  %541 = vmatprep.mubr.f32.mxu0 %v768_v6  ;;  %v730_v18 = vld [vmem:[%s340_s29] ss:$0 sm:$0xff]  ;;  %v731_v20 = vld [vmem:[%s340_s29 + $0x1] ss:$0 sm:$0xff]  ;;  %v569_v22 = vrot.slane %v555_v15, %v560_v14  ;;  %v561_v24 = vrot.slane %v554_v17, %v560_v14  ;;  %v573_v26 = vrot.slane %v555_v15, %v564_v16 }
  0x14   : > { %v565_v28 = vrot.slane %v554_v17, %v564_v16 }
  0x16   : > { %732 = vmatmul.mubr.msk.f32.vlgmr.msra.gmra.mrb[2].mxu0 %vm470_vm1, %v464_v11 }
  0xe5   : > { %v744_v19 = vpop.f32.mrb[0].mxu0  ;;  %v549_v21 = vpop.f32.mrb[0].mxu1 }
  0xe6   : > { %v437_v23 = vpop.f32.mrb[1].mxu0  ;;  %v551_v25 = vpop.f32.mrb[1].mxu1  ;;  %v461_v29 = vmul.f32 %v744_v19, %v731_v20  ;;  %v580_v31 = vmul.f32 %v569_v22, %v549_v21 }
  0xe7   : > { %v460_v27 = vmul.f32 %v730_v18, %v437_v23  ;;  %v581_v34 = vmul.f32 %v573_v26, %v551_v25 }
  0xe8   : > { %463 = vst [vmem:[%s352_s9 + $0x8] sm:$0xff] %v461_v29  ;;  %584 = vst [vmem:[%s359_s13 + $0x10] sm:$0xff] %v580_v31 }
  0xe9   : > { %462 = vst [vmem:[%s352_s9] sm:$0xff] %v460_v27  ;;  %v543_v30 = vpop.f32.mrb[2].mxu0  ;;  %585 = vst [vmem:[%s359_s13 + $0x18] sm:$0xff] %v581_v34 }
  0xea   : > { %v578_v32 = vmul.f32 %v561_v24, %v543_v30  ;;  %v545_v33 = vpop.f32.mrb[3].mxu0 }
  0xeb   : > { %v579_v35 = vmul.f32 %v565_v28, %v545_v33 }
  0xec   : > { %582 = vst [vmem:[%s359_s13] sm:$0xff] %v578_v32 }
  0xed   : > { %583 = vst [vmem:[%s359_s13 + $0x8] sm:$0xff] %v579_v35 }
  0xee PF: > { %s18_s24 = sadd.s32 1, %s766_s24  }
  0xef   : > { %p15_p4 = scmp.ge.s32.totalorder %s18_s24, 4  }
  0xf1   :  { %17 = sbr.rel (!%p15_p4) target bundleno = 1 (0x1), region = 95 }

</bundles_post_ra>
